<compile_context>
chip_gen: v7x
topology: tpu7x:2x2x1
jax: 0.10.0
libtpu: 0.0.40
codegen_flags: <defaults>
</compile_context>

<pallas_src>
import functools

import jax
import jax.numpy as jnp
from jax.experimental import pallas as pl
from jax.experimental.pallas import tpu as pltpu


# ---------------------------------------------------------------------------
# Kernel
# ---------------------------------------------------------------------------
def _moe_expert_kernel(order_ref, nhit_ref, x_ref, wup_ref, wgate_ref,
                       wdown_ref, wtok_ref, *rest, enable_secondary,
                       compute_dtype, num_secondary, secondary_size):
    """Grid step = (token tile ti, expert slot e).

    Expert slots are remapped through `order_ref` (hit experts first).  Slots
    with e >= num_hit alias the previous slot's weight block indices (no new
    weight DMA) and their compute is skipped via pl.when.
    """
    if enable_secondary:
        mask_ref, out_ref, acc_ref = rest
    else:
        out_ref, acc_ref = rest

    e = pl.program_id(1)

    @pl.when(e == 0)
    def _init():
        acc_ref[...] = jnp.zeros_like(acc_ref)

    @pl.when(e < nhit_ref[0])
    def _expert():
        x = x_ref[...].astype(compute_dtype)                           # (tm, H)
        # Weights were pre-transposed once at parameter-prep time, so these
        # are canonical (M, K) @ (K, N) MXU matmuls (no in-kernel transposes).
        up = jnp.dot(x, wup_ref[0], preferred_element_type=jnp.float32)      # (tm, F)
        gate = jnp.dot(x, wgate_ref[0], preferred_element_type=jnp.float32)  # (tm, F)
        h = (up * jnp.maximum(gate, 0.0)).astype(compute_dtype)        # (tm, F)

        if enable_secondary:
            # Compact (tm, Nsec) 0/1 mask, broadcast across each secondary
            # expert's lane slice (slice widths are lane-aligned when
            # secondary_size % 128 == 0).  Applied in compute_dtype.
            m = mask_ref[0].astype(compute_dtype)                      # (tm, Nsec)
            pieces = []
            for g in range(num_secondary):
                lo = g * secondary_size
                pieces.append(h[:, lo:lo + secondary_size] * m[:, g:g + 1])
            h = jnp.concatenate(pieces, axis=-1)                       # (tm, F)

        y = jnp.dot(h, wdown_ref[0], preferred_element_type=jnp.float32)     # (tm, H)
        # Per-token routing weight applied to the small (tm, H) result in f32.
        acc_ref[...] += y * wtok_ref[0].astype(jnp.float32)            # (tm, 1) bcast

    @pl.when(e == pl.num_programs(1) - 1)
    def _finalize():
        out_ref[...] = acc_ref[...].astype(out_ref.dtype)


# ---------------------------------------------------------------------------
# Helpers (plain-JAX routing glue, shared shapes)
# ---------------------------------------------------------------------------
def _route(router_2d, hidden_2d, w_router_t, config):
    """Top-k routing; logits in f32 so selection is stable across dtypes."""
    K = config["num_active_primary_experts"]
    src = router_2d if config["enable_early_router"] else hidden_2d
    logits = jnp.dot(src.astype(jnp.float32), w_router_t.astype(jnp.float32))
    top_vals, top_idx = jax.lax.top_k(logits, K)                       # (T, K)
    if config["apply_softmax"]:
        rw = jax.nn.softmax(top_vals, axis=1)
    else:
        rw = jax.nn.sigmoid(top_vals)
        rw = rw / jnp.sum(rw, axis=-1, keepdims=True)
    return top_vals, top_idx, rw                                       # f32


def _physical_vmem_bytes():
    default = 64 * 2**20   # conservative (v7x per-TensorCore VMEM)
    try:
        info = pltpu.get_tpu_info()
    except Exception:
        return default
    for attr in ("vmem_capacity_bytes", "vmem_size_bytes", "vmem_bytes"):
        val = getattr(info, attr, None)
        if val:
            return int(val)
    return default


def _pad128(n):
    return ((n + 127) // 128) * 128


# ---------------------------------------------------------------------------
# Forward (wrapper around pallas_call)
# ---------------------------------------------------------------------------
def smallthinker_moe_block(router_input, hidden_states, params, config):
    """params must be the output of prepare_params (pre-transposed weights)."""
    B, S, H = hidden_states.shape
    T = B * S
    x = hidden_states.reshape(T, H)
    r = router_input.reshape(T, H)

    E = config["num_primary_experts"]
    F = config["ffn_dim"]
    enable_secondary = config["enable_secondary"]
    Nsec = config.get("num_secondary_experts", 1) if enable_secondary else 1
    sz = config.get("secondary_expert_size", F) if enable_secondary else F
    if enable_secondary:
        assert Nsec * sz == F, "ffn_dim must equal num_secondary * secondary_size"

    compute_dtype = params["w_up_t"].dtype

    # ---- router / top-k / normalization (tiny, plain-JAX glue) ----
    top_vals, top_idx, routing_weights = _route(r, x, params["w_router_t"], config)
    one_hot = jax.nn.one_hot(top_idx, E, dtype=jnp.float32)            # (T, K, E)
    w_dense = jnp.einsum("tke,tk->et", one_hot, routing_weights)       # (E, T) f32
    wtok = w_dense[:, :, None].astype(hidden_states.dtype)             # (E, T, 1)

    # ---- compact secondary masks (sigmoid(z) > 0.5  <=>  z > 0, in f32) ----
    if enable_secondary:
        sg_logits = jnp.dot(r.astype(jnp.float32),
                            params["w_sg_t"].astype(jnp.float32))      # (T, E*Nsec)
        mask = (sg_logits > 0).astype(compute_dtype).reshape(T, E, Nsec)
        mask = jnp.transpose(mask, (1, 0, 2))                          # (E, T, Nsec)

    # ---- expert-skip bookkeeping (scalar prefetch) ----
    counts = jnp.sum(one_hot, axis=(0, 1))                             # (E,)
    hit = counts > 0
    num_hit = jnp.sum(hit.astype(jnp.int32))        # >= 1 whenever T >= 1
    order = jnp.argsort(jnp.logical_not(hit).astype(jnp.int32))        # hit first
    fill = order[jnp.maximum(num_hit - 1, 0)]       # last hit expert id
    expert_order = jnp.where(jnp.arange(E) < num_hit, order,
                             fill).astype(jnp.int32)                   # (E,)
    num_hit_arr = num_hit.reshape(1).astype(jnp.int32)                 # (1,)

    # ---- tiling / VMEM budget (generation-aware) ----
    w_item = jnp.dtype(compute_dtype).itemsize
    x_item = jnp.dtype(hidden_states.dtype).itemsize
    physical = _physical_vmem_bytes()
    budget = int(physical * 0.75)          # headroom for compiler-internal scratch

    def _est(tm_):
        est = 2 * 3 * _pad128(F) * _pad128(H) * w_item         # dbl-buffered weights
        est += 2 * tm_ * _pad128(H) * (x_item + x_item)        # x + out, dbl-buffered
        est += 2 * tm_ * 128 * x_item                          # wtok (lane-padded)
        if enable_secondary:
            est += 2 * tm_ * 128 * w_item                      # compact mask
        est += tm_ * _pad128(H) * 4                            # f32 accumulator
        return est

    tm = None
    for cand in (1024, 512, 256, 128):
        if _est(cand) <= budget:
            tm = cand
            break
    if tm is None:
        tm = 128                                  # let the compiler complain if huge
    if T <= tm:
        tm = T                                    # single full-extent token tile

    T_pad = ((T + tm - 1) // tm) * tm
    n_tiles = T_pad // tm
    if T_pad != T:
        pad = T_pad - T
        x = jnp.pad(x, ((0, pad), (0, 0)))        # zero rows contribute nothing
        wtok = jnp.pad(wtok, ((0, 0), (0, pad), (0, 0)))
        if enable_secondary:
            mask = jnp.pad(mask, ((0, 0), (0, pad), (0, 0)))

    vmem_limit = int(min(budget, max(32 * 2**20, 2 * _est(tm))))

    # ---- pallas_call ----
    kernel = functools.partial(_moe_expert_kernel,
                               enable_secondary=enable_secondary,
                               compute_dtype=compute_dtype,
                               num_secondary=Nsec,
                               secondary_size=sz)

    in_specs = [
        pl.BlockSpec((tm, H), lambda ti, e, order, nh: (ti, 0)),                 # x
        pl.BlockSpec((1, H, F), lambda ti, e, order, nh: (order[e], 0, 0)),      # w_up_t
        pl.BlockSpec((1, H, F), lambda ti, e, order, nh: (order[e], 0, 0)),      # w_gate_t
        pl.BlockSpec((1, F, H), lambda ti, e, order, nh: (order[e], 0, 0)),      # w_down_t
        pl.BlockSpec((1, tm, 1), lambda ti, e, order, nh: (order[e], ti, 0)),    # wtok
    ]
    inputs = [x, params["w_up_t"], params["w_gate_t"], params["w_down_t"], wtok]
    if enable_secondary:
        in_specs.append(
            pl.BlockSpec((1, tm, Nsec), lambda ti, e, order, nh: (order[e], ti, 0)))
        inputs.append(mask)

    out = pl.pallas_call(
        kernel,
        out_shape=jax.ShapeDtypeStruct((T_pad, H), hidden_states.dtype),
        grid_spec=pltpu.PrefetchScalarGridSpec(
            num_scalar_prefetch=2,
            grid=(n_tiles, E),
            in_specs=in_specs,
            out_specs=pl.BlockSpec((tm, H), lambda ti, e, order, nh: (ti, 0)),
            scratch_shapes=[pltpu.VMEM((tm, H), jnp.float32)],
        ),
        compiler_params=pltpu.CompilerParams(
            dimension_semantics=("parallel", "arbitrary"),
            vmem_limit_bytes=vmem_limit),
    )(expert_order, num_hit_arr, *inputs)

    out = out[:T]
    return out.reshape(B, S, H), top_vals


# ---------------------------------------------------------------------------
# Parameter prep (one-time layout transform; NOT part of the per-call path)
# ---------------------------------------------------------------------------
def prepare_params(params):
    prepared = {
        "w_router_t": jnp.transpose(params["w_router"]),               # (H, E)
        "w_up_t":     jnp.transpose(params["w_up"],   (0, 2, 1)),      # (E, H, F)
        "w_gate_t":   jnp.transpose(params["w_gate"], (0, 2, 1)),      # (E, H, F)
        "w_down_t":   jnp.transpose(params["w_down"], (0, 2, 1)),      # (E, F, H)
    }
    if "w_sg" in params:
        E, Nsec, Hd = params["w_sg"].shape
        prepared["w_sg_t"] = jnp.transpose(
            params["w_sg"].reshape(E * Nsec, Hd))                      # (H, E*Nsec)
    return jax.tree_util.tree_map(lambda a: jnp.asarray(a), prepared)


# ---------------------------------------------------------------------------
# Pure-JAX reference (mirror of the PyTorch forward, for verification)
# ---------------------------------------------------------------------------
def reference(router_input, hidden_states, params, config):
    B, S, H = hidden_states.shape
    x = hidden_states.reshape(-1, H)
    r = router_input.reshape(-1, H)
    E = config["num_primary_experts"]
    src = r if config["enable_early_router"] else x
    logits = jnp.dot(src.astype(jnp.float32),
                     params["w_router"].T.astype(jnp.float32))
    top_vals, top_idx = jax.lax.top_k(logits, config["num_active_primary_experts"])
    if config["apply_softmax"]:
        rw = jax.nn.softmax(top_vals, axis=1)
    else:
        rw = jax.nn.sigmoid(top_vals)
        rw = rw / rw.sum(-1, keepdims=True)
    rw = rw.astype(x.dtype)
    out = jnp.zeros_like(x)
    for e in range(E):
        h = (x @ params["w_up"][e].T) * jax.nn.relu(x @ params["w_gate"][e].T)
        if config["enable_secondary"]:
            z = jnp.dot(r.astype(jnp.float32),
                        params["w_sg"][e].T.astype(jnp.float32))
            m = (z > 0).astype(h.dtype)                                  # (T, Nsec)
            sz = config["secondary_expert_size"]
            h = (h.reshape(h.shape[0], -1, sz) * m[:, :, None]).reshape(h.shape[0], -1)
        y = h @ params["w_down"][e].T
        we = jnp.sum((top_idx == e) * rw, axis=-1)
        out = out + y * we[:, None]
    return out.reshape(B, S, H), top_vals


def make_params(key, config, dtype=jnp.float32):
    # Same (out_features, in_features) layouts as the PyTorch nn.Linear weights.
    H = config["hidden_dim"]
    F = config["ffn_dim"]
    E = config["num_primary_experts"]
    Nsec = config["num_secondary_experts"]
    ks = jax.random.split(key, 5)
    scale = 0.05
    return {
        "w_router": scale * jax.random.normal(ks[0], (E, H), dtype),
        "w_up":     scale * jax.random.normal(ks[1], (E, F, H), dtype),
        "w_gate":   scale * jax.random.normal(ks[2], (E, F, H), dtype),
        "w_down":   scale * jax.random.normal(ks[3], (E, H, F), dtype),
        "w_sg":     scale * jax.random.normal(ks[4], (E, Nsec, H), dtype),
    }


if __name__ == "__main__":
    config = {
        "hidden_dim": 128,
        "ffn_dim": 256,
        "num_primary_experts": 4,
        "num_active_primary_experts": 2,
        "enable_early_router": True,
        "apply_softmax": True,
        "enable_secondary": True,
        "num_secondary_experts": 2,
        "secondary_expert_size": 128,   # ffn_dim = num_secondary * secondary_size
    }
    B, S, H = 2, 8, config["hidden_dim"]

    key = jax.random.PRNGKey(0)
    k_p, k_h, k_r = jax.random.split(key, 3)
    params = make_params(k_p, config)
    prepared = prepare_params(params)           # one-time layout prep
    hidden_states = jax.random.normal(k_h, (B, S, H), jnp.float32)
    router_input = jax.random.normal(k_r, (B, S, H), jnp.float32)

    # ---- f32 correctness check ----
    out, router_logits = smallthinker_moe_block(router_input, hidden_states,
                                                prepared, config)
    out = jax.block_until_ready(out)
    router_logits = jax.block_until_ready(router_logits)

    ref_out, ref_logits = reference(router_input, hidden_states, params, config)
    assert out.shape == (B, S, H)
    assert router_logits.shape == (B * S, config["num_active_primary_experts"])
    assert jnp.allclose(out, ref_out, rtol=1e-3, atol=1e-3)
    assert jnp.allclose(router_logits, ref_logits, rtol=1e-3, atol=1e-3)

    # ---- bf16 fast path (bf16 weights/activations, f32 accumulation) ----
    params_bf16 = jax.tree_util.tree_map(lambda p: p.astype(jnp.bfloat16), params)
    prepared_bf16 = prepare_params(params_bf16)
    hs_bf16 = hidden_states.astype(jnp.bfloat16)
    ri_bf16 = router_input.astype(jnp.bfloat16)
    out_bf16, _ = smallthinker_moe_block(ri_bf16, hs_bf16, prepared_bf16, config)
    out_bf16 = jax.block_until_ready(out_bf16)
    ref_bf16, _ = reference(ri_bf16, hs_bf16, params_bf16, config)
    assert jnp.allclose(out_bf16.astype(jnp.float32),
                        ref_bf16.astype(jnp.float32), rtol=5e-2, atol=5e-2)

    print("KERNEL_OK")
</pallas_src>

<mosaic_0001>
module attributes {stable_mosaic.version = 11 : i64} {
  func.func @_moe_expert_kernel(%arg0: i32, %arg1: i32, %arg2: memref<4xi32, #tpu.memory_space<smem>>, %arg3: memref<1xi32, #tpu.memory_space<smem>>, %arg4: memref<16x128xf32, #tpu.memory_space<vmem>>, %arg5: memref<1x128x256xf32, #tpu.memory_space<vmem>>, %arg6: memref<1x128x256xf32, #tpu.memory_space<vmem>>, %arg7: memref<1x256x128xf32, #tpu.memory_space<vmem>>, %arg8: memref<1x16x1xf32, #tpu.memory_space<vmem>>, %arg9: memref<1x16x2xf32, #tpu.memory_space<vmem>>, %arg10: memref<16x128xf32, #tpu.memory_space<vmem>>, %arg11: memref<16x128xf32, #tpu.memory_space<vmem>>) attributes {dimension_semantics = [#tpu.dimension_semantics<parallel>, #tpu.dimension_semantics<arbitrary>], iteration_bounds = array<i64: 1, 4>, scalar_prefetch = 2 : i64, scratch_operands = 1 : i64, tpu.core_type = #tpu.core_type<tc>, window_params = [{transform_indices = @transform_0, window_bounds = array<i64: 16, 128>}, {transform_indices = @transform_1, window_bounds = array<i64: 1, 128, 256>}, {transform_indices = @transform_2, window_bounds = array<i64: 1, 128, 256>}, {transform_indices = @transform_3, window_bounds = array<i64: 1, 256, 128>}, {transform_indices = @transform_4, window_bounds = array<i64: 1, 16, 1>}, {transform_indices = @transform_5, window_bounds = array<i64: 1, 16, 2>}, {transform_indices = @transform_6, window_bounds = array<i64: 16, 128>}]} {
    %c0_i32 = arith.constant 0 : i32
    %0 = arith.cmpi eq, %arg1, %c0_i32 : i32
    %1 = arith.extui %0 : i1 to i32
    %c0_i32_0 = arith.constant 0 : i32
    %2 = arith.cmpi ne, %1, %c0_i32_0 : i32
    scf.if %2 {
      %cst = arith.constant 0.000000e+00 : f32
      %10 = vector.broadcast %cst : f32 to vector<16x128xf32>
      %c0_3 = arith.constant 0 : index
      %c0_4 = arith.constant 0 : index
      %11 = vector.load %arg11[%c0_3, %c0_4] : memref<16x128xf32, #tpu.memory_space<vmem>>, vector<16x128xf32>
      tpu.vector_store %arg11[%c0_3, %c0_4], %10 {strides = array<i32>} : memref<16x128xf32, #tpu.memory_space<vmem>>, vector<16x128xf32>,
    } else {
    }
    %c0 = arith.constant 0 : index
    %3 = memref.load %arg3[%c0] : memref<1xi32, #tpu.memory_space<smem>>
    %4 = arith.cmpi slt, %arg1, %3 : i32
    %5 = arith.extui %4 : i1 to i32
    %c0_i32_1 = arith.constant 0 : i32
    %6 = arith.cmpi ne, %5, %c0_i32_1 : i32
    scf.if %6 {
      %c0_3 = arith.constant 0 : index
      %c0_4 = arith.constant 0 : index
      %10 = vector.load %arg4[%c0_3, %c0_4] : memref<16x128xf32, #tpu.memory_space<vmem>>, vector<16x128xf32>
      %c0_5 = arith.constant 0 : index
      %c0_6 = arith.constant 0 : index
      %c0_7 = arith.constant 0 : index
      %11 = vector.load %arg5[%c0_5, %c0_6, %c0_7] : memref<1x128x256xf32, #tpu.memory_space<vmem>>, vector<1x128x256xf32>
      %12 = vector.shape_cast %11 : vector<1x128x256xf32> to vector<128x256xf32>
      %cst = arith.constant dense<0.000000e+00> : vector<16x256xf32>
      %13 = tpu.matmul %10, %12, %cst {dimension_numbers = #tpu.dot_dimension_numbers<[1], [0], [0], [1], [0, 0, 1, 1], [], []>} : vector<16x128xf32>, vector<128x256xf32>, vector<16x256xf32> -> vector<16x256xf32>
      %c0_8 = arith.constant 0 : index
      %c0_9 = arith.constant 0 : index
      %c0_10 = arith.constant 0 : index
      %14 = vector.load %arg6[%c0_8, %c0_9, %c0_10] : memref<1x128x256xf32, #tpu.memory_space<vmem>>, vector<1x128x256xf32>
      %15 = vector.shape_cast %14 : vector<1x128x256xf32> to vector<128x256xf32>
      %cst_11 = arith.constant dense<0.000000e+00> : vector<16x256xf32>
      %16 = tpu.matmul %10, %15, %cst_11 {dimension_numbers = #tpu.dot_dimension_numbers<[1], [0], [0], [1], [0, 0, 1, 1], [], []>} : vector<16x128xf32>, vector<128x256xf32>, vector<16x256xf32> -> vector<16x256xf32>
      %cst_12 = arith.constant 0.000000e+00 : f32
      %17 = vector.broadcast %cst_12 : f32 to vector<16x256xf32>
      %18 = arith.maximumf %16, %17 : vector<16x256xf32>
      %19 = arith.mulf %13, %18 : vector<16x256xf32>
      %c0_13 = arith.constant 0 : index
      %c0_14 = arith.constant 0 : index
      %c0_15 = arith.constant 0 : index
      %20 = vector.load %arg9[%c0_13, %c0_14, %c0_15] : memref<1x16x2xf32, #tpu.memory_space<vmem>>, vector<1x16x2xf32>
      %21 = vector.shape_cast %20 : vector<1x16x2xf32> to vector<16x2xf32>
      %22 = vector.extract_strided_slice %19 {offsets = [0, 0], sizes = [16, 128], strides = [1, 1]} : vector<16x256xf32> to vector<16x128xf32>
      %23 = vector.extract_strided_slice %21 {offsets = [0, 0], sizes = [16, 1], strides = [1, 1]} : vector<16x2xf32> to vector<16x1xf32>
      %24 = vector.broadcast %23 : vector<16x1xf32> to vector<16x128xf32>
      %25 = arith.mulf %22, %24 : vector<16x128xf32>
      %26 = vector.extract_strided_slice %19 {offsets = [0, 128], sizes = [16, 128], strides = [1, 1]} : vector<16x256xf32> to vector<16x128xf32>
      %27 = vector.extract_strided_slice %21 {offsets = [0, 1], sizes = [16, 1], strides = [1, 1]} : vector<16x2xf32> to vector<16x1xf32>
      %28 = vector.broadcast %27 : vector<16x1xf32> to vector<16x128xf32>
      %29 = arith.mulf %26, %28 : vector<16x128xf32>
      %30 = tpu.concatenate %25, %29 in 1 : vector<16x128xf32>, vector<16x128xf32> -> vector<16x256xf32>
      %c0_16 = arith.constant 0 : index
      %c0_17 = arith.constant 0 : index
      %c0_18 = arith.constant 0 : index
      %31 = vector.load %arg7[%c0_16, %c0_17, %c0_18] : memref<1x256x128xf32, #tpu.memory_space<vmem>>, vector<1x256x128xf32>
      %32 = vector.shape_cast %31 : vector<1x256x128xf32> to vector<256x128xf32>
      %cst_19 = arith.constant dense<0.000000e+00> : vector<16x128xf32>
      %33 = tpu.matmul %30, %32, %cst_19 {dimension_numbers = #tpu.dot_dimension_numbers<[1], [0], [0], [1], [0, 0, 1, 1], [], []>} : vector<16x256xf32>, vector<256x128xf32>, vector<16x128xf32> -> vector<16x128xf32>
      %c0_20 = arith.constant 0 : index
      %c0_21 = arith.constant 0 : index
      %34 = vector.load %arg11[%c0_20, %c0_21] : memref<16x128xf32, #tpu.memory_space<vmem>>, vector<16x128xf32>
      %c0_22 = arith.constant 0 : index
      %c0_23 = arith.constant 0 : index
      %c0_24 = arith.constant 0 : index
      %35 = vector.load %arg8[%c0_22, %c0_23, %c0_24] : memref<1x16x1xf32, #tpu.memory_space<vmem>>, vector<1x16x1xf32>
      %36 = vector.shape_cast %35 : vector<1x16x1xf32> to vector<16x1xf32>
      %37 = vector.broadcast %36 : vector<16x1xf32> to vector<16x128xf32>
      %38 = arith.mulf %33, %37 : vector<16x128xf32>
      %39 = arith.addf %34, %38 : vector<16x128xf32>
      %c0_25 = arith.constant 0 : index
      %c0_26 = arith.constant 0 : index
      %40 = vector.load %arg11[%c0_25, %c0_26] : memref<16x128xf32, #tpu.memory_space<vmem>>, vector<16x128xf32>
      tpu.vector_store %arg11[%c0_25, %c0_26], %39 {strides = array<i32>} : memref<16x128xf32, #tpu.memory_space<vmem>>, vector<16x128xf32>,
    } else {
    }
    %c3_i32 = arith.constant 3 : i32
    %7 = arith.cmpi eq, %arg1, %c3_i32 : i32
    %8 = arith.extui %7 : i1 to i32
    %c0_i32_2 = arith.constant 0 : i32
    %9 = arith.cmpi ne, %8, %c0_i32_2 : i32
    scf.if %9 {
      %c0_3 = arith.constant 0 : index
      %c0_4 = arith.constant 0 : index
      %10 = vector.load %arg11[%c0_3, %c0_4] : memref<16x128xf32, #tpu.memory_space<vmem>>, vector<16x128xf32>
      %c0_5 = arith.constant 0 : index
      %c0_6 = arith.constant 0 : index
      %11 = vector.load %arg10[%c0_5, %c0_6] : memref<16x128xf32, #tpu.memory_space<vmem>>, vector<16x128xf32>
      tpu.vector_store %arg10[%c0_5, %c0_6], %10 {strides = array<i32>} : memref<16x128xf32, #tpu.memory_space<vmem>>, vector<16x128xf32>,
    } else {
    }
    return
  }
  func.func @transform_0(%arg0: i32, %arg1: i32, %arg2: memref<4xi32, #tpu.memory_space<smem>>, %arg3: memref<1xi32, #tpu.memory_space<smem>>) -> (i32, i32) {
    %c0_i32 = arith.constant 0 : i32
    %c0_i32_0 = arith.constant 0 : i32
    return %arg0, %c0_i32 : i32, i32
  }
  func.func @transform_1(%arg0: i32, %arg1: i32, %arg2: memref<4xi32, #tpu.memory_space<smem>>, %arg3: memref<1xi32, #tpu.memory_space<smem>>) -> (i32, i32, i32) {
    %0 = arith.index_cast %arg1 : i32 to index
    %1 = memref.load %arg2[%0] : memref<4xi32, #tpu.memory_space<smem>>
    %c0_i32 = arith.constant 0 : i32
    %c0_i32_0 = arith.constant 0 : i32
    %c0_i32_1 = arith.constant 0 : i32
    return %1, %c0_i32, %c0_i32_0 : i32, i32, i32
  }
  func.func @transform_2(%arg0: i32, %arg1: i32, %arg2: memref<4xi32, #tpu.memory_space<smem>>, %arg3: memref<1xi32, #tpu.memory_space<smem>>) -> (i32, i32, i32) {
    %0 = arith.index_cast %arg1 : i32 to index
    %1 = memref.load %arg2[%0] : memref<4xi32, #tpu.memory_space<smem>>
    %c0_i32 = arith.constant 0 : i32
    %c0_i32_0 = arith.constant 0 : i32
    %c0_i32_1 = arith.constant 0 : i32
    return %1, %c0_i32, %c0_i32_0 : i32, i32, i32
  }
  func.func @transform_3(%arg0: i32, %arg1: i32, %arg2: memref<4xi32, #tpu.memory_space<smem>>, %arg3: memref<1xi32, #tpu.memory_space<smem>>) -> (i32, i32, i32) {
    %0 = arith.index_cast %arg1 : i32 to index
    %1 = memref.load %arg2[%0] : memref<4xi32, #tpu.memory_space<smem>>
    %c0_i32 = arith.constant 0 : i32
    %c0_i32_0 = arith.constant 0 : i32
    %c0_i32_1 = arith.constant 0 : i32
    return %1, %c0_i32, %c0_i32_0 : i32, i32, i32
  }
  func.func @transform_4(%arg0: i32, %arg1: i32, %arg2: memref<4xi32, #tpu.memory_space<smem>>, %arg3: memref<1xi32, #tpu.memory_space<smem>>) -> (i32, i32, i32) {
    %0 = arith.index_cast %arg1 : i32 to index
    %1 = memref.load %arg2[%0] : memref<4xi32, #tpu.memory_space<smem>>
    %c0_i32 = arith.constant 0 : i32
    %c0_i32_0 = arith.constant 0 : i32
    return %1, %arg0, %c0_i32 : i32, i32, i32
  }
  func.func @transform_5(%arg0: i32, %arg1: i32, %arg2: memref<4xi32, #tpu.memory_space<smem>>, %arg3: memref<1xi32, #tpu.memory_space<smem>>) -> (i32, i32, i32) {
    %0 = arith.index_cast %arg1 : i32 to index
    %1 = memref.load %arg2[%0] : memref<4xi32, #tpu.memory_space<smem>>
    %c0_i32 = arith.constant 0 : i32
    %c0_i32_0 = arith.constant 0 : i32
    return %1, %arg0, %c0_i32 : i32, i32, i32
  }
  func.func @transform_6(%arg0: i32, %arg1: i32, %arg2: memref<4xi32, #tpu.memory_space<smem>>, %arg3: memref<1xi32, #tpu.memory_space<smem>>) -> (i32, i32) {
    %c0_i32 = arith.constant 0 : i32
    %c0_i32_0 = arith.constant 0 : i32
    return %arg0, %c0_i32 : i32, i32
  }
}

</mosaic_0001>

<bundles_post_ra>
// kernel: tpu_custom_call.1
= control target key start
LH: loop header
LB: loop body
LE: loop exit
PB: predicated region body
PF: predicated region fallthrough
CT: control target
= control target key end

     0   :  { %s2197_s0 = inlined_call_operand.vmem [shape: s32[4], index: 0, kind: input, shape index: {}]   ;;  %s2198_s1 = inlined_call_operand.<no memory space> [shape: s32[1], index: 1, kind: input, shape index: {}]   ;;  %s2199_s2 = inlined_call_operand.vmem [shape: f32[16,128], index: 2, kind: input, shape index: {}]   ;;  %s2200_s3 = inlined_call_operand.hbm [shape: f32[4,128,256], index: 3, kind: input, shape index: {}]   ;;  %s2201_s4 = inlined_call_operand.hbm [shape: f32[4,128,256], index: 4, kind: input, shape index: {}]   ;;  %s2202_s5 = inlined_call_operand.hbm [shape: f32[4,256,128], index: 5, kind: input, shape index: {}]   ;;  %s2203_s6 = inlined_call_operand.vmem [shape: f32[4,16,1], index: 6, kind: input, shape index: {}]   ;;  %s2204_s7 = inlined_call_operand.vmem [shape: f32[4,16,2], index: 7, kind: input, shape index: {}]   ;;  %s2205_s8 = inlined_call_operand.hbm [shape: f32[16,128], index: 8, kind: output, shape index: {}]  }
   0x1   :  { %2219 = sst [smem:[#allocation29_spill]] %s2199_s2  ;;  %s13_s29 = sshll.u32 %s2197_s0, 4  ;;  %s14_s29 = int_to_ptr.vmem [resolvable:$true] %s13_s29 }
   0x2   :  { %2220 = sst [smem:[#allocation30_spill]] %s2200_s3  ;;  %s1376_s10 = scalar_lea.vmem %s14_s29, 16 }
   0x3   :  { %2221 = sst [smem:[#allocation31_spill]] %s2201_s4  ;;  %p1377_p0 = scmp.ne.s32.totalorder %s14_s29, %s1376_s10 }
   0x4   :  { %2222 = sst [smem:[#allocation32_spill]] %s2204_s7  ;;  %p1381_p1 = scmp.lt.s32.totalorder %s14_s29, %s14_s29 }
   0x5   :  { %2223 = sst [smem:[#allocation33_spill]] %s2205_s8  ;;  %p1382_p2 = scmp.lt.s32.totalorder %s1376_s10, %s1376_s10 }
   0x6   :  { %17 = sst [smem:[#allocation5]] %s2198_s1 }
   0x7   :  { %p1383_p3 = por %p1382_p2, %p1381_p1 }
   0x9   :  { %p1384_p4 = pnand %p1383_p3, %p1377_p0 }
   0xb   :  { %1387 = shalt.err (!%p1384_p4)  }
   0xc   :  { %s1618_s11 = smov [#allocation4]  }
   0xd   :  { %16 = dma.vmem_to_smem %s14_s29, 16, %s1618_s11, [#allocation3] }
   0xe   :  { %1552 = dma.done.wait [#allocation3], 16 }
   0xf   :  { %1553 = vsyncadd [#allocation3], 4294967280 }
  0x10   :  { %19 = sfence }
  0x11   :  { %20 = vsyncpa [#allocation7], 0 }
  0x12   :  { %22 = vsyncpa [#allocation7 + $0x1], 0 }
  0x13   :  { %23 = vsyncpa [#allocation10], 0 }
  0x14   :  { %25 = vsyncpa [#allocation10 + $0x1], 0 }
  0x15   :  { %26 = vsyncpa [#allocation8], 0  ;;  %s1684_s0 = smov 0   ;;  %s1686_s1 = smov 0  }
  0x16   :  { %s1688_s12 = smov 0   ;;  %s1690_s13 = smov 0  }
  0x17   :  { %s1692_s14 = smov 0   ;;  %s1694_s15 = smov 0  }
  0x18   :  { %s1696_s16 = smov 0   ;;  %s1698_s17 = smov 0  }
  0x19   :  { %s1700_s18 = smov 0   ;;  %s1702_s19 = smov 0  }
  0x1a   :  { %s1704_s20 = smov 0   ;;  %s1706_s21 = smov 0  }
  0x1b LB: > { %2224 = sst [smem:[#allocation24_spill]] %s1592_s15  ;;  %s1743_s22 = sadd.s32 4294967295, %s1616_s21   ;;  %s1616_s21 = sphi %s1706_s21, %s32_s21   ;;  %s1612_s20 = sphi %s1704_s20, %s2273_s20   ;;  %s1608_s19 = sphi %s1702_s19, %s2272_s19   ;;  %s1604_s18 = sphi %s1700_s18, %s2263_s18   ;;  %s1600_s17 = sphi %s1698_s17, %s2271_s17   ;;  %s1596_s16 = sphi %s1696_s16, %s2270_s16   ;;  %s1592_s15 = sphi %s1694_s15, %s2261_s15   ;;  %s1588_s14 = sphi %s1692_s14, %s2269_s14   ;;  %s1584_s13 = sphi %s1690_s13, %s2268_s13   ;;  %s1580_s12 = sphi %s1688_s12, %s2267_s12   ;;  %s1576_s1 = sphi %s1686_s1, %s2266_s1   ;;  %s1572_s0 = sphi %s1684_s0, %s2265_s0  }
  0x1c   : > { %2225 = sst [smem:[#allocation25_spill]] %s1604_s18  ;;  %s41_s23 = sadd.s32 1, %s1612_s20 }
  0x1d   : > { %p42_p5 = scmp.ge.s32.totalorder %s41_s23, 4  ;;  %p2209_p6 = scmp.eq.s32.totalorder %s1616_s21, 0 }
  0x1e   : > { %p2210_p7 = scmp.eq.s32.totalorder %s1743_s22, 0  ;;  %s102_s24 = sld [smem:[#allocation4 + %s1612_s20]] }
  0x1f   : > { %s2275_s23 = smov (%p42_p5, %s41_s23), 0  ;;  %s107_s25 = sadd.s32 1, %s1592_s15 }
  0x20   : > { %2226 = sst [smem:[#allocation26_spill]] %s2275_s23  ;;  %p114_p8 = scmp.ne.s32.totalorder %s1592_s15, %s1588_s14 }
  0x21   : > { %s103_s26 = sld [smem:[#allocation4 + %s2275_s23]]  ;;  %p120_p9 = scmp.ne.s32.totalorder %s1588_s14, %s1584_s13 }
  0x22   : > { %p1758_p10 = por %p114_p8, %p2209_p6  ;;  %p2208_p12 = scmp.lt.s32.totalorder %s1616_s21, 4 }
  0x23   : > { %p1764_p11 = por %p120_p9, %p2210_p7  ;;  %s289_s29 = sand.u32 1, %s1616_s21  }
  0x24   : > { %s291_s30 = sand.u32 1, %s1592_s15   ;;  %p1789_p0 = pnand %p2208_p12, %p1758_p10 }
  0x25   : > { %s2228_s28 = scalar_select %p1764_p11, 1, 0 }
  0x26   : > { %s1054_s9 = sshll.u32 %s291_s30, 8  ;;  %p1060_p1 = scmp.ge.s32.totalorder %s1616_s21, 1 }
  0x27   : > { %s104_s10 = ssub.s32 %s102_s24, %s103_s26  ;;  %s293_s11 = scalar_lea.vmem [#allocation9], %s1054_s9 }
  0x28   : > { %p105_p13 = scmp.eq.s32.totalorder %s104_s10, 0  ;;  %s301_s13 = sshll.u32 %s293_s11, 4  ;;  %s1783_s13 = int_to_ptr.vmem [resolvable:$true] %s301_s13 }
  0x29   : > { %s1233_s8 = scalar_select %p1758_p10, [#allocation4], [#allocation14] }
  0x2a   : > { %s1774_s2 = scalar_select %p105_p13, %s1592_s15, %s107_s25  }
  0x2b   : > { %s1234_s7 = scalar_select %p1758_p10, %s1612_s20, 0 }
  0x2c   : > { %2229 = sst [smem:[#allocation27_spill]] %s1774_s2  ;;  %s2277_s8 = smov (!%p2208_p12, %s1233_s8), [#allocation17] }
  0x2d   : > { %s2279_s7 = smov (!%p2208_p12, %s1234_s7), 0  ;;  %p361_p2 = scmp.lt.s32.totalorder %s1616_s21, 5 }
  0x2e   : > { %s294_s26 = sld [smem:[%s2277_s8 + %s2279_s7]]  ;;  %s1807_s2 = scalar_lea.sflag [#allocation10], %s289_s29 }
  0x2f   : > { %p1795_p3 = pnand %p1060_p1, %p361_p2  ;;  %s2232_s4 = sld [smem:[#allocation31_spill]] }
  0x30   : > { %s1805_s27 = sld [smem:[#allocation4 + %s1612_s20]]  ;;  %p1390_p5 = pneg %p1789_p0 }
  0x31   : > { %s2231_s25 = scalar_select %p1795_p3, 1, 0 }
  0x34   : > { %s1076_s30 = sshll.u32 %s294_s26, 12 }
  0x35   : > { %s1802_s11 = scalar_lea.hbm %s2232_s4, %s1076_s30  ;;  %s1393_s30 = scalar_lea.hbm %s2232_s4, 16384 }
  0x36   : > { %s1388_s7 = scalar_lea.hbm %s1802_s11, 4096  ;;  %p1394_p10 = scmp.lt.u32.totalorder %s1802_s11, %s2232_s4 }
  0x37   : > { %p1389_p4 = scmp.ne.s32.totalorder %s1802_s11, %s1388_s7  ;;  %p1395_p13 = scmp.lt.u32.totalorder %s1393_s30, %s1388_s7 }
  0x38   : > { %p1397_p2 = scmp.lt.u32.totalorder %s1388_s7, %s1802_s11 }
  0x39   : > { %p1391_p8 = pnand %p1390_p5, %p1389_p4  ;;  %p1396_p1 = por %p1395_p13, %p1394_p10 }
  0x3b   : > { %p1392_p9 = pneg %p1391_p8  ;;  %p1398_p12 = por %p1397_p2, %p1396_p1 }
  0x3d   : > { %p1399_p6 = pnand %p1398_p12, %p1392_p9 }
  0x3f   : > { %1402 = shalt.err (!%p1399_p6)
}
  0x40   : > { %s1403_s29 = scalar_lea.vmem %s1783_s13, 4096  ;;  %s1619_s8 = smov [#allocation9]  }
  0x41   : > { %p1404_p4 = scmp.ne.s32.totalorder %s1783_s13, %s1403_s29  ;;  %s1408_s26 = sshll.u32 %s1619_s8, 4  ;;  %s1409_s26 = int_to_ptr.vmem [resolvable:$false] %s1408_s26 }
  0x42   : > { %s1410_s9 = scalar_lea.vmem %s1409_s26, 8192  ;;  %p1411_p11 = scmp.lt.s32.totalorder %s1783_s13, %s1409_s26 }
  0x43   : > { %p1406_p8 = pnand %p1404_p4, %p1390_p5  ;;  %p1412_p10 = scmp.lt.s32.totalorder %s1410_s9, %s1403_s29 }
  0x45   : > { %p1407_p7 = pneg %p1406_p8  ;;  %p1413_p13 = por %p1412_p10, %p1411_p11 }
  0x47   : > { %p1414_p1 = pnand %p1413_p13, %p1407_p7 }
  0x49   : > { %1417 = shalt.err (!%p1414_p1)
}
  0x4a   : > { %s2212_s7 = smov 256   ;;  %s2213_s30 = smov 16  }
  0x4b   : > { %1256 = dma.hbm_to_vmem [thread:$0]  (!%p1789_p0), %s1802_s11, 4096, %s1783_s13, %s1807_s2, %s2212_s7, %s2212_s7, %s2213_s30  }
  0x4c   : > { %s75_s10 = sld [smem:[#allocation4 + %s2275_s23]]  ;;  %p86_p6 = scmp.ne.s32.totalorder %s1604_s18, %s1600_s17 }
  0x4d   : > { %p92_p7 = scmp.ne.s32.totalorder %s1600_s17, %s1596_s16  ;;  %s267_s29 = sand.u32 1, %s1604_s18  }
  0x4e   : > { %s79_s8 = sadd.s32 1, %s1604_s18  ;;  %p2233_p11 = scmp.eq.s32.totalorder %s1743_s22, 0 }
  0x4f   : > { %p2235_p5 = scmp.eq.s32.totalorder %s1616_s21, 0  ;;  %s1051_s13 = sshll.u32 %s267_s29, 8 }
  0x50   : > { %p1847_p12 = por %p2233_p11, %p92_p7  ;;  %p2236_p0 = scmp.lt.s32.totalorder %s1616_s21, 4 }
  0x51   : > { %p88_p9 = por %p2235_p5, %p86_p6  ;;  %s271_s11 = scalar_lea.vmem [#allocation6], %s1051_s13 }
  0x52   : > { %s2234_s26 = scalar_select %p1847_p12, 1, 0 }
  0x53   : > { %s76_s24 = ssub.s32 %s1805_s27, %s75_s10  ;;  %p1856_p2 = pnand %p2236_p0, %p88_p9 }
  0x54   : > { %p77_p4 = scmp.eq.s32.totalorder %s76_s24, 0  ;;  %s279_s9 = sshll.u32 %s271_s11, 4  ;;  %s1878_s9 = int_to_ptr.vmem [resolvable:$true] %s279_s9 }
  0x55   : > { %s1230_s7 = scalar_select %p88_p9, [#allocation4], [#allocation13] }
  0x56   : > { %s1861_s30 = scalar_select %p77_p4, %s1604_s18, %s79_s8  }
  0x57   : > { %s1231_s4 = scalar_select %p88_p9, %s1612_s20, 0 }
  0x58   : > { %2238 = sst [smem:[#allocation28_spill]] %s1861_s30  ;;  %p2239_p8 = pmov %p2236_p0 }
  0x59   : > { %p2240_p10 = pmov %p2236_p0  ;;  %s1869_s10 = sld [smem:[#allocation4 + %s1612_s20]] }
  0x5a   : > { %s2281_s7 = smov (!%p2239_p8, %s1230_s7), [#allocation16]  ;;  %s1872_s15 = sld [smem:[#allocation4 + %s2275_s23]] }
  0x5b   : > { %s2283_s4 = smov (!%p2240_p10, %s1231_s4), 0  ;;  %p142_p13 = scmp.ne.s32.totalorder %s1580_s12, %s1576_s1 }
  0x5c   : > { %s272_s27 = sld [smem:[%s2281_s7 + %s2283_s4]]  ;;  %p148_p1 = scmp.ne.s32.totalorder %s1576_s1, %s1572_s0 }
  0x5d   : > { %p2241_p6 = pmov %p2235_p5  ;;  %s2243_s3 = sld [smem:[#allocation30_spill]] }
  0x5e   : > { %p1894_p5 = por %p148_p1, %p2233_p11  ;;  %s1898_s0 = scalar_lea.sflag [#allocation7], %s267_s29 }
  0x5f   : > { %p1883_p7 = por %p142_p13, %p2241_p6  ;;  %p1420_p0 = pneg %p1856_p2 }
  0x60   : > { %s2244_s4 = scalar_select %p1894_p5, 1, 0 }
  0x62   : > { %s1075_s24 = sshll.u32 %s272_s27, 12 }
  0x63   : > { %s1890_s18 = scalar_lea.hbm %s2243_s3, %s1075_s24  ;;  %s1423_s24 = scalar_lea.hbm %s2243_s3, 16384 }
  0x64   : > { %s1418_s7 = scalar_lea.hbm %s1890_s18, 4096  ;;  %p1424_p10 = scmp.lt.u32.totalorder %s1890_s18, %s2243_s3 }
  0x65   : > { %p1419_p9 = scmp.ne.s32.totalorder %s1890_s18, %s1418_s7  ;;  %p1425_p13 = scmp.lt.u32.totalorder %s1423_s24, %s1418_s7 }
  0x66   : > { %p1427_p6 = scmp.lt.u32.totalorder %s1418_s7, %s1890_s18 }
  0x67   : > { %p1421_p4 = pnand %p1420_p0, %p1419_p9  ;;  %p1426_p1 = por %p1425_p13, %p1424_p10 }
  0x69   : > { %p1422_p8 = pneg %p1421_p4  ;;  %p1428_p11 = por %p1427_p6, %p1426_p1 }
  0x6b   : > { %p1429_p5 = pnand %p1428_p11, %p1422_p8 }
  0x6d   : > { %1432 = shalt.err (!%p1429_p5)
}
  0x6e   : > { %s1433_s29 = scalar_lea.vmem %s1878_s9, 4096  ;;  %s1622_s30 = smov [#allocation6]  }
  0x6f   : > { %p1434_p9 = scmp.ne.s32.totalorder %s1878_s9, %s1433_s29  ;;  %s1438_s27 = sshll.u32 %s1622_s30, 4  ;;  %s1439_s27 = int_to_ptr.vmem [resolvable:$false] %s1438_s27 }
  0x70   : > { %s1440_s13 = scalar_lea.vmem %s1439_s27, 8192  ;;  %p1441_p3 = scmp.lt.s32.totalorder %s1878_s9, %s1439_s27 }
  0x71   : > { %p1436_p4 = pnand %p1434_p9, %p1420_p0  ;;  %p1442_p10 = scmp.lt.s32.totalorder %s1440_s13, %s1433_s29 }
  0x73   : > { %p1437_p12 = pneg %p1436_p4  ;;  %p1443_p13 = por %p1442_p10, %p1441_p3 }
  0x75   : > { %p1444_p1 = pnand %p1443_p13, %p1437_p12 }
  0x77   : > { %1447 = shalt.err (!%p1444_p1)
}
  0x78   : > { %s2245_s7 = smov 16   ;;  %s2246_s24 = smov 256  }
  0x79   : > { %1251 = dma.hbm_to_vmem [thread:$0]  (!%p1856_p2), %s1890_s18, 4096, %s1878_s9, %s1898_s0, %s2246_s24, %s2246_s24, %s2245_s7  }
  0x7a   : > { %s132_s16 = ssub.s32 %s1869_s10, %s1872_s15  ;;  %s135_s11 = sadd.s32 1, %s1580_s12 }
  0x7b   : > { %p133_p3 = scmp.eq.s32.totalorder %s132_s16, 0  ;;  %s2247_s29 = sand.u32 1, %s1580_s12  }
  0x7c   : > { %s1057_s30 = sshll.u32 %s2247_s29, 8  ;;  %p2248_p12 = scmp.lt.s32.totalorder %s1616_s21, 4 }
  0x7d   : > { %s1236_s27 = scalar_select %p1883_p7, [#allocation4], [#allocation15] }
  0x7e   : > { %s1937_s13 = scalar_select %p133_p3, %s1580_s12, %s135_s11  }
  0x7f   : > { %s1237_s3 = scalar_select %p1883_p7, %s1612_s20, 0 }
  0x80   : > { %s2285_s27 = smov (!%p2248_p12, %s1236_s27), [#allocation18]  ;;  %p2249_p5 = pmov %p2248_p12 }
  0x81   : > { %s315_s18 = scalar_lea.vmem [#allocation11], %s1057_s30  ;;  %s1453_s11 = scalar_lea.hbm %s2202_s5, 16384 }
  0x82   : > { %s2287_s3 = smov (!%p2249_p5, %s1237_s3), 0  ;;  %p2250_p0 = pmov %p2249_p5 }
  0x83   : > { %s316_s15 = sld [smem:[%s2285_s27 + %s2287_s3]]  ;;  %s323_s9 = sshll.u32 %s315_s18, 4  ;;  %s1954_s9 = int_to_ptr.vmem [resolvable:$true] %s323_s9 }
  0x84   : > { %p1950_p8 = pnand %p2250_p0, %p1883_p7 }
  0x86   : > { %p1450_p7 = pneg %p1950_p8 }
  0x89   : > { %s1077_s10 = sshll.u32 %s316_s15, 12 }
  0x8a   : > { %s1959_s24 = scalar_lea.hbm %s2202_s5, %s1077_s10 }
  0x8b   : > { %s1448_s8 = scalar_lea.hbm %s1959_s24, 4096  ;;  %p1454_p9 = scmp.lt.u32.totalorder %s1959_s24, %s2202_s5 }
  0x8c   : > { %p1449_p2 = scmp.ne.s32.totalorder %s1959_s24, %s1448_s8  ;;  %p1455_p4 = scmp.lt.u32.totalorder %s1453_s11, %s1448_s8 }
  0x8d   : > { %p1457_p13 = scmp.lt.u32.totalorder %s1448_s8, %s1959_s24 }
  0x8e   : > { %p1451_p6 = pnand %p1450_p7, %p1449_p2  ;;  %p1456_p10 = por %p1455_p4, %p1454_p9 }
  0x90   : > { %p1452_p11 = pneg %p1451_p6  ;;  %p1458_p1 = por %p1457_p13, %p1456_p10 }
  0x92   : > { %p1459_p3 = pnand %p1458_p1, %p1452_p11 }
  0x94   : > { %1462 = shalt.err (!%p1459_p3)
}
  0x95   : > { %s1463_s27 = scalar_lea.vmem %s1954_s9, 4096  ;;  %s1623_s15 = smov [#allocation11]  }
  0x96   : > { %p1464_p12 = scmp.ne.s32.totalorder %s1954_s9, %s1463_s27  ;;  %s1468_s18 = sshll.u32 %s1623_s15, 4  ;;  %s1469_s18 = int_to_ptr.vmem [resolvable:$false] %s1468_s18 }
  0x97   : > { %s1470_s10 = scalar_lea.vmem %s1469_s18, 8192  ;;  %p1471_p2 = scmp.lt.s32.totalorder %s1954_s9, %s1469_s18 }
  0x98   : > { %p1466_p5 = pnand %p1464_p12, %p1450_p7  ;;  %p1472_p6 = scmp.lt.s32.totalorder %s1470_s10, %s1463_s27 }
  0x9a   : > { %p1467_p0 = pneg %p1466_p5  ;;  %p1473_p9 = por %p1472_p6, %p1471_p2 }
  0x9c   : > { %p1474_p4 = pnand %p1473_p9, %p1467_p0 }
  0x9e   : > { %1477 = shalt.err (!%p1474_p4)
}
  0x9f   : > { %s1624_s0 = smov 128   ;;  %s1625_s7 = smov 8  }
  0xa0   : > { %1261 = dma.hbm_to_vmem [thread:$0]  (!%p1950_p8), %s1959_s24, 4096, %s1954_s9, %s1807_s2, %s1624_s0, %s1624_s0, %s1625_s7  }
  0xa1   : > { %p2252_p7 = scmp.ne.s32.totalorder %s2231_s25, 0 }
  0xa2   : > { %s367_s8 = sand.u32 (!%p2252_p7), 1, %s1600_s17   ;;  %p2253_p11 = scmp.ne.s32.totalorder (!%p2252_p7), %s2234_s26, 0 }
  0xa3   : > { %365 = sbr.rel (%p2252_p7) target bundleno = 719 (0x2cf), region = 44  ;;  %s1061_s3 = sshll.u32 (!%p2252_p7), %s367_s8, 8 }
  0xa4   : > { %s368_s16 = scalar_lea.sflag (!%p2252_p7), [#allocation7], %s367_s8  ;;  %s1990_s11 = scalar_lea.vmem (!%p2252_p7), [#allocation6], %s1061_s3 }
  0xaa   : > { %1555 = dma.done.wait (%p2253_p11), %s368_s16, 4096  }
  0xab   : > { %1557 = vsyncadd (%p2253_p11), %s368_s16, 4294963200  ;;  %s376_s23 = sand.u32 1, %s1743_s22   ;;  %s378_s2 = sand.u32 1, %s1588_s14  }
  0xac   : > { %s1062_s9 = sshll.u32 %s378_s2, 8  ;;  %s377_s25 = scalar_lea.sflag [#allocation10], %s376_s23 }
  0xad   : > { %s1998_s24 = scalar_lea.vmem [#allocation9], %s1062_s9  ;;  %p2254_p8 = scmp.ne.s32.totalorder %s2228_s28, 0 }
  0xaf   : > { %1559 = dma.done.wait (%p2254_p8), %s377_s25, 4096  }
  0xb0   : > { %1561 = vsyncadd (%p2254_p8), %s377_s25, 4294963200  ;;  %s387_s29 = sand.u32 1, %s1576_s1   ;;  %p2255_p10 = scmp.ne.s32.totalorder %s2244_s4, 0 }
  0xb1   : > { %s1063_s30 = sshll.u32 %s387_s29, 8 }
  0xb2   : > { %s2005_s26 = scalar_lea.vmem [#allocation11], %s1063_s30 }
  0xb3   : > { %1563 = dma.done.wait (%p2255_p10), %s377_s25, 4096  }
  0xb4   : > { %1565 = vsyncadd (%p2255_p10), %s377_s25, 4294963200  ;;  %s457_s27 = sld [smem:[#allocation4 + %s1608_s19]]  ;;  %p1068_p3 = scmp.ne.s32.totalorder %s1608_s19, 0 }
  0xb5   : > { %s469_s15 = sld [smem:[#allocation4 + %s1608_s19]]  ;;  %v1626_v0 = vmov (!%p1068_p3), 0.0  }
  0xb6   : > { %s2256_s16 = sld [smem:[#allocation32_spill]]  ;;  %486 = vst [vmem:[#allocation2] sm:$0xff] (!%p1068_p3), %v1626_v0  ;;  %487 = vst [vmem:[#allocation2 + $0x8] sm:$0xff] (!%p1068_p3), %v1626_v0 }
  0xb9   : > { %485 = sbr.rel (%p1068_p3) target bundleno = 192 (0xc0), region = 60 }
  0xba   : > { %p459_p13 = scmp.lt.s32.totalorder %s457_s27, 3 }
  0xbb   : > { %p471_p1 = scmp.lt.s32.totalorder %s469_s15, 3 }
  0xbc   : > { %s2289_s27 = smov (!%p459_p13, %s457_s27), 3 }
  0xbd   : > { %s2291_s15 = smov (!%p471_p1, %s469_s15), 3  ;;  %s1078_s28 = sshll.u32 %s2289_s27, 4 }
  0xbe   : > { %s2016_s0 = scalar_lea.vmem %s2203_s6, %s1078_s28  ;;  %s1079_s7 = sshll.u32 %s2291_s15, 4 }
  0xbf   : > { %s2021_s4 = scalar_lea.vmem %s2256_s16, %s1079_s7 }
  0xc0 PF: > { %s488_s23 = sld [smem:[#allocation5]] }
  0xc6   : > { %p1069_p12 = scmp.ge.s32.totalorder %s1608_s19, %s488_s23 }
  0xc7   : > { %v605_v1 = vld [vmem:[%s1998_s24 + $0x8] sm:$0xff] (!%p1069_p12)  ;;  %v607_v2 = vld [vmem:[%s1998_s24 + $0x18] sm:$0xff] (!%p1069_p12)  ;;  %v604_v6 = vld [vmem:[%s1998_s24] sm:$0xff] (!%p1069_p12)  ;;  %v1627_v8 = vmov (!%p1069_p12), 0.0   ;;  %v1628_v14 = vmov (!%p1069_p12), 0   ;;  %v1629_v15 = vmov (!%p1069_p12), 1  }
  0xc8   : > { %492 = sbr.rel (%p1069_p12) target bundleno = 678 (0x2a6), region = 64  ;;  %v496_v3 = vld [vmem:[%s1990_s11 + $0x8] sm:$0xff] (!%p1069_p12)  ;;  %v1150_v4 = vpack.c.bf16 (!%p1069_p12), %v607_v2, %v605_v1  ;;  %v498_v5 = vld [vmem:[%s1990_s11 + $0x18] sm:$0xff] (!%p1069_p12)  ;;  %v606_v7 = vld [vmem:[%s1998_s24 + $0x10] sm:$0xff] (!%p1069_p12)  ;;  %700 = vmatprep.mubr.f32.mxu1 (!%p1069_p12), %v1627_v8  ;;  %591 = vmatprep.mubr.f32.mxu0 (!%p1069_p12), %v1627_v8  ;;  %s2257_s9 = sld [smem:[#allocation29_spill]] (!%p1069_p12) }
  0xc9   : > { %v1118_v9 = vpack.c.bf16 (!%p1069_p12), %v498_v5, %v496_v3  ;;  %v1152_v10 = vpack.c.bf16 (!%p1069_p12), %v606_v7, %v604_v6  ;;  %v495_v11 = vld [vmem:[%s1990_s11] sm:$0xff] (!%p1069_p12)  ;;  %v497_v12 = vld [vmem:[%s1990_s11 + $0x10] sm:$0xff] (!%p1069_p12)  ;;  %v609_v13 = vld [vmem:[%s1998_s24 + $0x28] sm:$0xff] (!%p1069_p12)  ;;  %1374 = vset.pattern.permute.xlu1 (!%p1069_p12), %v1628_v14  ;;  %1373 = vset.pattern.permute.xlu0 (!%p1069_p12), %v1629_v15 }
  0xca   : > { %1151 = vmatprep.subr.bf16.mxu1 (!%p1069_p12), %v1150_v4  ;;  %v1120_v16 = vpack.c.bf16 (!%p1069_p12), %v497_v12, %v495_v11  ;;  %v611_v17 = vld [vmem:[%s1998_s24 + $0x38] sm:$0xff] (!%p1069_p12)  ;;  %v500_v18 = vld [vmem:[%s1990_s11 + $0x28] sm:$0xff] (!%p1069_p12)  ;;  %v608_v22 = vld [vmem:[%s1998_s24 + $0x20] sm:$0xff] (!%p1069_p12) }
  0xcb   : > { %v502_v19 = vld [vmem:[%s1990_s11 + $0x38] sm:$0xff] (!%p1069_p12)  ;;  %1119 = vmatprep.subr.bf16.mxu0 (!%p1069_p12), %v1118_v9  ;;  %1153 = vmatpush1.bf16.msra.mxu1 (!%p1069_p12), %v1152_v10  ;;  %v1154_v20 = vpack.c.bf16 (!%p1069_p12), %v611_v17, %v609_v13  ;;  %v610_v23 = vld [vmem:[%s1998_s24 + $0x30] sm:$0xff] (!%p1069_p12)  ;;  %v499_v24 = vld [vmem:[%s1990_s11 + $0x20] sm:$0xff] (!%p1069_p12) }
  0xcc   : > { %v1122_v21 = vpack.c.bf16 (!%p1069_p12), %v502_v19, %v500_v18  ;;  %1121 = vmatpush1.bf16.msra.mxu0 (!%p1069_p12), %v1120_v16  ;;  %v1156_v25 = vpack.c.bf16 (!%p1069_p12), %v610_v23, %v608_v22  ;;  %v501_v26 = vld [vmem:[%s1990_s11 + $0x30] sm:$0xff] (!%p1069_p12)  ;;  %v613_v27 = vld [vmem:[%s1998_s24 + $0x48] sm:$0xff] (!%p1069_p12)  ;;  %v615_v28 = vld [vmem:[%s1998_s24 + $0x58] sm:$0xff] (!%p1069_p12) }
  0xcd   : > { %1155 = vmatprep.subr.bf16.mxu1 (!%p1069_p12), %v1154_v20  ;;  %v1124_v29 = vpack.c.bf16 (!%p1069_p12), %v501_v26, %v499_v24  ;;  %v1158_v30 = vpack.c.bf16 (!%p1069_p12), %v615_v28, %v613_v27  ;;  %v504_v31 = vld [vmem:[%s1990_s11 + $0x48] sm:$0xff] (!%p1069_p12)  ;;  %v506_v32 = vld [vmem:[%s1990_s11 + $0x58] sm:$0xff] (!%p1069_p12)  ;;  %v612_v33 = vld [vmem:[%s1998_s24 + $0x40] sm:$0xff] (!%p1069_p12) }
  0xce   : > { %1123 = vmatprep.subr.bf16.mxu0 (!%p1069_p12), %v1122_v21  ;;  %v1126_v34 = vpack.c.bf16 (!%p1069_p12), %v506_v32, %v504_v31  ;;  %v614_v35 = vld [vmem:[%s1998_s24 + $0x50] sm:$0xff] (!%p1069_p12)  ;;  %v503_v36 = vld [vmem:[%s1990_s11 + $0x40] sm:$0xff] (!%p1069_p12)  ;;  %v617_v39 = vld [vmem:[%s1998_s24 + $0x68] sm:$0xff] (!%p1069_p12) }
  0xcf   : > { %v505_v37 = vld [vmem:[%s1990_s11 + $0x50] sm:$0xff]  ;;  %1157 = vmatpush1.bf16.msra.mxu1 %v1156_v25  ;;  %v1160_v38 = vpack.c.bf16 %v614_v35, %v612_v33  ;;  %v619_v40 = vld [vmem:[%s1998_s24 + $0x78] sm:$0xff]  ;;  %v508_v41 = vld [vmem:[%s1990_s11 + $0x68] sm:$0xff] }
  0xd0   : > { %1125 = vmatpush1.bf16.msra.mxu0 %v1124_v29  ;;  %1159 = vmatprep.subr.bf16.mxu1 %v1158_v30  ;;  %v1128_v42 = vpack.c.bf16 %v505_v37, %v503_v36  ;;  %v1162_v43 = vpack.c.bf16 %v619_v40, %v617_v39  ;;  %v510_v44 = vld [vmem:[%s1990_s11 + $0x78] sm:$0xff]  ;;  %v616_v45 = vld [vmem:[%s1998_s24 + $0x60] sm:$0xff]  ;;  %v618_v46 = vld [vmem:[%s1998_s24 + $0x70] sm:$0xff] }
  0xd1   : > { %1127 = vmatprep.subr.bf16.mxu0 %v1126_v34  ;;  %v1130_v47 = vpack.c.bf16 %v510_v44, %v508_v41  ;;  %v507_v48 = vld [vmem:[%s1990_s11 + $0x60] sm:$0xff]  ;;  %v509_v49 = vld [vmem:[%s1990_s11 + $0x70] sm:$0xff]  ;;  %v621_v50 = vld [vmem:[%s1998_s24 + $0x88] sm:$0xff]  ;;  %v1164_v54 = vpack.c.bf16 %v618_v46, %v616_v45 }
  0xd2   : > { %v623_v51 = vld [vmem:[%s1998_s24 + $0x98] sm:$0xff]  ;;  %v512_v52 = vld [vmem:[%s1990_s11 + $0x88] sm:$0xff]  ;;  %v1132_v55 = vpack.c.bf16 %v509_v49, %v507_v48  ;;  %v620_v57 = vld [vmem:[%s1998_s24 + $0x80] sm:$0xff] }
  0xd3   : > { %v514_v53 = vld [vmem:[%s1990_s11 + $0x98] sm:$0xff]  ;;  %1161 = vmatpush1.bf16.msra.mxu1 %v1160_v38  ;;  %v1166_v56 = vpack.c.bf16 %v623_v51, %v621_v50  ;;  %v622_v58 = vld [vmem:[%s1998_s24 + $0x90] sm:$0xff]  ;;  %v511_v59 = vld [vmem:[%s1990_s11 + $0x80] sm:$0xff] }
  0xd4   : > { %1129 = vmatpush1.bf16.msra.mxu0 %v1128_v42  ;;  %1163 = vmatprep.subr.bf16.mxu1 %v1162_v43  ;;  %v1134_v60 = vpack.c.bf16 %v514_v53, %v512_v52  ;;  %v513_v61 = vld [vmem:[%s1990_s11 + $0x90] sm:$0xff]  ;;  %v625_v62 = vld [vmem:[%s1998_s24 + $0xa8] sm:$0xff]  ;;  %v627_v63 = vld [vmem:[%s1998_s24 + $0xb8] sm:$0xff]  ;;  %v1168_v2 = vpack.c.bf16 %v622_v58, %v620_v57 }
  0xd5   : > { %1131 = vmatprep.subr.bf16.mxu0 %v1130_v47  ;;  %v516_v0 = vld [vmem:[%s1990_s11 + $0xa8] sm:$0xff]  ;;  %v518_v1 = vld [vmem:[%s1990_s11 + $0xb8] sm:$0xff]  ;;  %v1136_v3 = vpack.c.bf16 %v513_v61, %v511_v59  ;;  %v1170_v4 = vpack.c.bf16 %v627_v63, %v625_v62  ;;  %v624_v5 = vld [vmem:[%s1998_s24 + $0xa0] sm:$0xff] }
  0xd6   : > { %v626_v6 = vld [vmem:[%s1998_s24 + $0xb0] sm:$0xff]  ;;  %v515_v7 = vld [vmem:[%s1990_s11 + $0xa0] sm:$0xff]  ;;  %v1138_v9 = vpack.c.bf16 %v518_v1, %v516_v0  ;;  %v629_v11 = vld [vmem:[%s1998_s24 + $0xc8] sm:$0xff] }
  0xd7   : > { %1165 = vmatpush1.bf16.msra.mxu1 %v1164_v54  ;;  %v517_v10 = vld [vmem:[%s1990_s11 + $0xb0] sm:$0xff]  ;;  %v631_v12 = vld [vmem:[%s1998_s24 + $0xd8] sm:$0xff]  ;;  %v520_v13 = vld [vmem:[%s1990_s11 + $0xc8] sm:$0xff]  ;;  %v1172_v16 = vpack.c.bf16 %v626_v6, %v624_v5 }
  0xd8   : > { %1133 = vmatpush1.bf16.msra.mxu0 %v1132_v55  ;;  %1167 = vmatprep.subr.bf16.mxu1 %v1166_v56  ;;  %v522_v15 = vld [vmem:[%s1990_s11 + $0xd8] sm:$0xff]  ;;  %v628_v17 = vld [vmem:[%s1998_s24 + $0xc0] sm:$0xff]  ;;  %v1140_v18 = vpack.c.bf16 %v517_v10, %v515_v7  ;;  %v1174_v19 = vpack.c.bf16 %v631_v12, %v629_v11  ;;  %v630_v20 = vld [vmem:[%s1998_s24 + $0xd0] sm:$0xff] }
  0xd9   : > { %1135 = vmatprep.subr.bf16.mxu0 %v1134_v60  ;;  %v519_v21 = vld [vmem:[%s1990_s11 + $0xc0] sm:$0xff]  ;;  %v521_v22 = vld [vmem:[%s1990_s11 + $0xd0] sm:$0xff]  ;;  %v1142_v23 = vpack.c.bf16 %v522_v15, %v520_v13  ;;  %v633_v24 = vld [vmem:[%s1998_s24 + $0xe8] sm:$0xff]  ;;  %v1176_v29 = vpack.c.bf16 %v630_v20, %v628_v17 }
  0xda   : > { %v635_v25 = vld [vmem:[%s1998_s24 + $0xf8] sm:$0xff]  ;;  %v721_v26 = vld [vmem:[%s2021_s4] sm:$0xff]  ;;  %v524_v27 = vld [vmem:[%s1990_s11 + $0xe8] sm:$0xff]  ;;  %v1144_v31 = vpack.c.bf16 %v521_v22, %v519_v21 }
  0xdb   : > { %1169 = vmatpush1.bf16.msra.mxu1 %v1168_v2  ;;  %v526_v28 = vld [vmem:[%s1990_s11 + $0xf8] sm:$0xff]  ;;  %725 = vperm.xlu1 %1374, %v721_v26   ;;  %v1178_v32 = vpack.c.bf16 %v635_v25, %v633_v24  ;;  %v632_v33 = vld [vmem:[%s1998_s24 + $0xe0] sm:$0xff]  ;;  %v634_v34 = vld [vmem:[%s1998_s24 + $0xf0] sm:$0xff] }
  0xdc   : > { %1137 = vmatpush1.bf16.msra.mxu0 %v1136_v3  ;;  %1171 = vmatprep.subr.bf16.mxu1 %v1170_v4  ;;  %v722_v30 = vld [vmem:[%s2021_s4 + $0x8] sm:$0xff]  ;;  %v1146_v35 = vpack.c.bf16 %v526_v28, %v524_v27  ;;  %v523_v36 = vld [vmem:[%s1990_s11 + $0xe0] sm:$0xff]  ;;  %v525_v37 = vld [vmem:[%s1990_s11 + $0xf0] sm:$0xff]  ;;  %v1180_v40 = vpack.c.bf16 %v634_v34, %v632_v33 }
  0xdd   : > { %1139 = vmatprep.subr.bf16.mxu0 %v1138_v9  ;;  %736 = vperm.xlu0 %1373, %v721_v26   ;;  %v761_v38 = vld [vmem:[%s2005_s26 + $0x80] sm:$0xff]  ;;  %v762_v39 = vld [vmem:[%s2005_s26 + $0x88] sm:$0xff]  ;;  %v855_v41 = vld [vmem:[%s2016_s0 + $0x8] sm:$0xff]  ;;  %v1148_v42 = vpack.c.bf16 %v525_v37, %v523_v36 }
  0xde   : > { %v1182_v43 = vpack.c.bf16 %v762_v39, %v761_v38  ;;  %v745_v44 = vld [vmem:[%s2005_s26] sm:$0xff]  ;;  %v746_v45 = vld [vmem:[%s2005_s26 + $0x8] sm:$0xff]  ;;  %v763_v46 = vld [vmem:[%s2005_s26 + $0x90] sm:$0xff] }
  0xdf   : > { %1173 = vmatpush1.bf16.msra.mxu1 %v1172_v16  ;;  %730 = vperm.xlu1 %1374, %v722_v30   ;;  %v764_v47 = vld [vmem:[%s2005_s26 + $0x98] sm:$0xff]  ;;  %v493_v48 = vld [vmem:[%s2257_s9] sm:$0xff]  ;;  %v1184_v49 = vpack.c.bf16 %v746_v45, %v745_v44  ;;  %v765_v53 = vld [vmem:[%s2005_s26 + $0xa0] sm:$0xff] }
  0xe0   : > { %1141 = vmatpush1.bf16.msra.mxu0 %v1140_v18  ;;  %1175 = vmatprep.subr.bf16.mxu1 %v1174_v19  ;;  %v1186_v50 = vpack.c.bf16 %v764_v47, %v763_v46  ;;  %v747_v51 = vld [vmem:[%s2005_s26 + $0x10] sm:$0xff]  ;;  %v748_v52 = vld [vmem:[%s2005_s26 + $0x18] sm:$0xff]  ;;  %v766_v54 = vld [vmem:[%s2005_s26 + $0xa8] sm:$0xff] }
  0xe1   : > { %1143 = vmatprep.subr.bf16.mxu0 %v1142_v23  ;;  %740 = vperm.xlu0 %1373, %v722_v30   ;;  %v1188_v55 = vpack.c.bf16 %v748_v52, %v747_v51  ;;  %v1190_v56 = vpack.c.bf16 %v766_v54, %v765_v53  ;;  %v749_v57 = vld [vmem:[%s2005_s26 + $0x20] sm:$0xff]  ;;  %v750_v58 = vld [vmem:[%s2005_s26 + $0x28] sm:$0xff]  ;;  %v767_v59 = vld [vmem:[%s2005_s26 + $0xb0] sm:$0xff] }
  0xe2   : > { %v768_v60 = vld [vmem:[%s2005_s26 + $0xb8] sm:$0xff]  ;;  %v751_v62 = vld [vmem:[%s2005_s26 + $0x30] sm:$0xff]  ;;  %v769_v0 = vld [vmem:[%s2005_s26 + $0xc0] sm:$0xff] }
  0xe3   : > { %1177 = vmatpush1.bf16.msra.mxu1 %v1176_v29  ;;  %863 = vperm.xlu1 %1374, %v855_v41   ;;  %v1194_v61 = vpack.c.bf16 %v768_v60, %v767_v59  ;;  %v752_v63 = vld [vmem:[%s2005_s26 + $0x38] sm:$0xff]  ;;  %v770_v1 = vld [vmem:[%s2005_s26 + $0xc8] sm:$0xff]  ;;  %v753_v4 = vld [vmem:[%s2005_s26 + $0x40] sm:$0xff] }
  0xe4   : > { %1145 = vmatpush1.bf16.msra.mxu0 %v1144_v31  ;;  %1179 = vmatprep.subr.bf16.mxu1 %v1178_v32  ;;  %v1196_v2 = vpack.c.bf16 %v752_v63, %v751_v62  ;;  %v1198_v3 = vpack.c.bf16 %v770_v1, %v769_v0  ;;  %v754_v5 = vld [vmem:[%s2005_s26 + $0x48] sm:$0xff]  ;;  %v771_v6 = vld [vmem:[%s2005_s26 + $0xd0] sm:$0xff]  ;;  %v772_v7 = vld [vmem:[%s2005_s26 + $0xd8] sm:$0xff] }
  0xe5   : > { %1147 = vmatprep.subr.bf16.mxu0 %v1146_v35  ;;  %1375 = vset.pattern.permute.xlu0 %v1628_v14  ;;  %v494_v14 = vld [vmem:[%s2257_s9 + $0x8] sm:$0xff]  ;;  %v1200_v9 = vpack.c.bf16 %v754_v5, %v753_v4  ;;  %v1202_v10 = vpack.c.bf16 %v772_v7, %v771_v6  ;;  %v755_v11 = vld [vmem:[%s2005_s26 + $0x50] sm:$0xff]  ;;  %v773_v15 = vld [vmem:[%s2005_s26 + $0xe0] sm:$0xff] }
  0xe6   : > { %v756_v12 = vld [vmem:[%s2005_s26 + $0x58] sm:$0xff]  ;;  %v774_v16 = vld [vmem:[%s2005_s26 + $0xe8] sm:$0xff]  ;;  %v757_v18 = vld [vmem:[%s2005_s26 + $0x60] sm:$0xff] }
  0xe7   : > { %1181 = vmatpush1.bf16.msra.mxu1 %v1180_v40  ;;  %v1204_v13 = vpack.c.bf16 %v756_v12, %v755_v11  ;;  %v1206_v17 = vpack.c.bf16 %v774_v16, %v773_v15  ;;  %v758_v19 = vld [vmem:[%s2005_s26 + $0x68] sm:$0xff]  ;;  %v775_v21 = vld [vmem:[%s2005_s26 + $0xf0] sm:$0xff]  ;;  %v776_v22 = vld [vmem:[%s2005_s26 + $0xf8] sm:$0xff] }
  0xe8   : > { %1149 = vmatpush1.bf16.msra.mxu0 %v1148_v42  ;;  %1214 = vmatprep.subr.bf16.mxu1 %v1182_v43  ;;  %v1208_v20 = vpack.c.bf16 %v758_v19, %v757_v18  ;;  %v1210_v23 = vpack.c.bf16 %v776_v22, %v775_v21  ;;  %v759_v24 = vld [vmem:[%s2005_s26 + $0x70] sm:$0xff]  ;;  %v760_v25 = vld [vmem:[%s2005_s26 + $0x78] sm:$0xff] }
  0xe9   : > { %1183 = vmatprep.subr.bf16.mxu0 %v1182_v43  ;;  %v1212_v26 = vpack.c.bf16 %v760_v25, %v759_v24  ;;  %v854_v27 = vld [vmem:[%s2016_s0] sm:$0xff] }
  0xea   : > { %701 = vmatmul.mubr.f32.vlgmr.msra.gmra.mrb[0].mxu1 %v493_v48  ;;  %858 = vperm.xlu0 %1375, %v854_v27  }
  0xeb   : > { %592 = vmatmul.mubr.f32.vlgmr.msra.gmra.mrb[0].mxu0 %v493_v48  ;;  %706 = vmatprep.mubr.f32.mxu1 %v1627_v8 }
  0xec   : > { %597 = vmatprep.mubr.f32.mxu0 %v1627_v8  ;;  %1185 = vmatpush3.bf16.msra.mxu0 %v1184_v49  ;;  %v1192_v8 = vpack.c.bf16 %v750_v58, %v749_v57 }
  0xed   : > { %1187 = vmatprep.subr.bf16.mxu0 %v1186_v50  ;;  %1222 = vmatpush3.bf16.msra.mxu1 %v1184_v49 }
  0xee   : > { %707 = vmatmul.mubr.f32.gmra.mrb[2].mxu1 %v494_v14  ;;  %1215 = vmatprep.subr.bf16.mxu1 %v1186_v50 }
  0xef   : > { %598 = vmatmul.mubr.f32.gmra.mrb[2].mxu0 %v494_v14 }
  0xf0   : > { %1189 = vmatpush3.bf16.msra.mxu0 %v1188_v55 }
  0xf1   : > { %1191 = vmatprep.subr.bf16.mxu0 %v1190_v56  ;;  %1223 = vmatpush3.bf16.msra.mxu1 %v1188_v55  ;;  %v852_v55 = vld [vmem:[#allocation2] sm:$0xff] }
  0xf2   : > { %1216 = vmatprep.subr.bf16.mxu1 %v1190_v56 }
  0xf4   : > { %1193 = vmatpush3.bf16.msra.mxu0 %v1192_v8 }
  0xf5   : > { %1195 = vmatprep.subr.bf16.mxu0 %v1194_v61  ;;  %1224 = vmatpush3.bf16.msra.mxu1 %v1192_v8 }
  0xf6   : > { %1217 = vmatprep.subr.bf16.mxu1 %v1194_v61  ;;  %v853_v61 = vld [vmem:[#allocation2 + $0x8] sm:$0xff] }
  0xf8   : > { %1197 = vmatpush3.bf16.msra.mxu0 %v1196_v2 }
  0xf9   : > { %1199 = vmatprep.subr.bf16.mxu0 %v1198_v3  ;;  %1225 = vmatpush3.bf16.msra.mxu1 %v1196_v2 }
  0xfa   : > { %1218 = vmatprep.subr.bf16.mxu1 %v1198_v3 }
  0xfc   : > { %1201 = vmatpush3.bf16.msra.mxu0 %v1200_v9 }
  0xfd   : > { %1203 = vmatprep.subr.bf16.mxu0 %v1202_v10  ;;  %1226 = vmatpush3.bf16.msra.mxu1 %v1200_v9 }
  0xfe   : > { %1219 = vmatprep.subr.bf16.mxu1 %v1202_v10 }
 0x100   : > { %1205 = vmatpush3.bf16.msra.mxu0 %v1204_v13 }
 0x101   : > { %1227 = vmatpush3.bf16.msra.mxu1 %v1204_v13  ;;  %1207 = vmatprep.subr.bf16.mxu0 %v1206_v17 }
 0x102   : > { %1220 = vmatprep.subr.bf16.mxu1 %v1206_v17 }
 0x104   : > { %1209 = vmatpush3.bf16.msra.mxu0 %v1208_v20 }
 0x105   : > { %1228 = vmatpush3.bf16.msra.mxu1 %v1208_v20  ;;  %1211 = vmatprep.subr.bf16.mxu0 %v1210_v23 }
 0x106   : > { %1221 = vmatprep.subr.bf16.mxu1 %v1210_v23 }
 0x108   : > { %1213 = vmatpush3.bf16.msra.mxu0 %v1212_v26 }
 0x109   : > { %1229 = vmatpush3.bf16.msra.mxu1 %v1212_v26 }
 0x15a   : > { %v726_v36 = vpop.permute.xlu1 %725 }
 0x15c   : > { %v737_v34 = vpop.permute.xlu0 %736 }
 0x15e   : > { %v731_v49 = vpop.permute.xlu1 %730 }
 0x160   : > { %v741_v48 = vpop.permute.xlu0 %740 }
 0x162   : > { %v864_v8 = vpop.permute.xlu1 %863 }
 0x169   : > { %v859_v54 = vpop.permute.xlu0 %858 }
 0x1bd   : > { %v702_v28 = vpop.f32.mrb[0].mxu1 }
 0x1be   : > { %v713_v29 = vmax.f32 %v702_v28, 0.0  ;;  %v593_v30 = vpop.f32.mrb[0].mxu0  ;;  %v704_v31 = vpop.f32.mrb[1].mxu1 }
 0x1bf   : > { %v714_v32 = vmax.f32 %v704_v31, 0.0  ;;  %v595_v33 = vpop.f32.mrb[1].mxu0 }
 0x1c0   : > { %v717_v35 = vmul.f32 %v713_v29, %v593_v30 }
 0x1c1   : > { %v718_v37 = vmul.f32 %v714_v32, %v595_v33  ;;  %v708_v38 = vpop.f32.mrb[2].mxu1 }
 0x1c2   : > { %v715_v39 = vmax.f32 %v708_v38, 0.0  ;;  %v599_v40 = vpop.f32.mrb[2].mxu0  ;;  %v710_v41 = vpop.f32.mrb[3].mxu1  ;;  %v733_v45 = vmul.f32 %v726_v36, %v717_v35 }
 0x1c3   : > { %v743_v42 = vmul.f32 %v737_v34, %v718_v37  ;;  %v716_v43 = vmax.f32 %v710_v41, 0.0  ;;  %v601_v44 = vpop.f32.mrb[3].mxu0 }
 0x1c4   : > { %v719_v46 = vmul.f32 %v715_v39, %v599_v40 }
 0x1c5   : > { %v720_v47 = vmul.f32 %v716_v43, %v601_v44  ;;  %841 = vmatprep.mubr.f32.mxu0 %v743_v42 }
 0x1c6   : > { %842 = vmatmul.mubr.f32.vlgmr.msra.gmra.mrb[4].mxu0 %v733_v45  ;;  %v734_v51 = vmul.f32 %v731_v49, %v719_v46 }
 0x1c7   : > { %v744_v50 = vmul.f32 %v741_v48, %v720_v47 }
 0x1c9   : > { %846 = vmatprep.mubr.f32.mxu1 %v744_v50 }
 0x1ca   : > { %847 = vmatmul.mubr.f32.vlgmr.msra.gmra.mrb[4].mxu1 %v734_v51 }
 0x299   : > { %v1112_v52 = vpop.f32.mrb[4].mxu0 }
 0x29a   : > { %v1113_v53 = vpop.f32.mrb[5].mxu0 }
 0x29b   : > { %v1114_v14 = vadd.f32 %v1113_v53, %v1112_v52 }
 0x29d   : > { %v866_v56 = vmul.f32 %v1114_v14, %v859_v54  ;;  %v1115_v57 = vpop.f32.mrb[4].mxu1 }
 0x29e   : > { %v1116_v58 = vpop.f32.mrb[5].mxu1 }
 0x29f   : > { %v868_v59 = vadd.f32 %v866_v56, %v852_v55  ;;  %v1117_v60 = vadd.f32 %v1116_v58, %v1115_v57 }
 0x2a1   : > { %870 = vst [vmem:[#allocation2] sm:$0xff] %v868_v59  ;;  %v867_v62 = vmul.f32 %v1117_v60, %v864_v8 }
 0x2a3   : > { %v869_v63 = vadd.f32 %v867_v62, %v853_v61 }
 0x2a5   : > { %871 = vst [vmem:[#allocation2 + $0x8] sm:$0xff] %v869_v63 }
 0x2a6 PF: > { %p1070_p5 = scmp.ne.s32.totalorder %s1608_s19, 3 }
 0x2a8   : > { %875 = sbr.rel (%p1070_p5) target bundleno = 687 (0x2af), region = 68  ;;  %v876_v0 = vld [vmem:[#allocation2] sm:$0xff] (!%p1070_p5) }
 0x2a9   : > { %878 = vst [vmem:[#allocation12] sm:$0xff] (!%p1070_p5), %v876_v0 }
 0x2ac   : > { %v877_v1 = vld [vmem:[#allocation2 + $0x8] sm:$0xff] (!%p1070_p5) }
 0x2ad   : > { %879 = vst [vmem:[#allocation12 + $0x8] sm:$0xff] (!%p1070_p5), %v877_v1 }
 0x2af PF: > { %p1263_p0 = scmp.eq.s32.totalorder %s1743_s22, 3  ;;  %s1630_s29 = smov [#allocation12]  }
 0x2b0   : > { %s889_s30 = sshll.u32 %s1630_s29, 4  ;;  %s890_s30 = int_to_ptr.vmem [resolvable:$true] %s889_s30 }
 0x2b1   : > { %s1478_s26 = scalar_lea.vmem %s890_s30, 256  ;;  %p1485_p4 = scmp.lt.s32.totalorder %s890_s30, %s890_s30 }
 0x2b2   : > { %p1479_p2 = scmp.ne.s32.totalorder %s890_s30, %s1478_s26  ;;  %p1486_p7 = scmp.lt.s32.totalorder %s1478_s26, %s1478_s26 }
 0x2b4   : > { %p1480_p6 = pnand %p1479_p2, %p1263_p0  ;;  %p1487_p11 = por %p1486_p7, %p1485_p4 }
 0x2b6   : > { %p1481_p9 = pneg %p1480_p6 }
 0x2b8   : > { %p1488_p8 = pnand %p1487_p11, %p1481_p9 }
 0x2ba   : > { %1491 = shalt.err (!%p1488_p8)
}
 0x2bb   : > { %s2258_s15 = sld [smem:[#allocation33_spill]] }
 0x2c1   : > { %s2259_s28 = smov %s2258_s15  ;;  %s1492_s18 = scalar_lea.hbm %s2258_s15, 256 }
 0x2c2   : > { %p1493_p10 = scmp.ne.s32.totalorder %s2259_s28, %s1492_s18  ;;  %p1498_p3 = scmp.lt.u32.totalorder %s1492_s18, %s2259_s28 }
 0x2c4   : > { %p1494_p13 = pnand %p1493_p10, %p1263_p0 }
 0x2c6   : > { %p1495_p1 = pneg %p1494_p13 }
 0x2c8   : > { %p1500_p12 = pnand %p1498_p3, %p1495_p1 }
 0x2ca   : > { %1503 = shalt.err (!%p1500_p12)
}
 0x2cb   : > { %s1631_s3 = smov 128   ;;  %s1632_s16 = smov 8  }
 0x2cc   : > { %1243 = dma.vmem_to_hbm [thread:$0]  (%p1263_p0), %s890_s30, 256, %s2259_s28, [#allocation8], %s1631_s3, %s1631_s3, %s1632_s16  }
 0x2cd   : > { %1567 = dma.done.wait (%p1263_p0), [#allocation8], 256  }
 0x2ce   : > { %1569 = vsyncadd (%p1263_p0), [#allocation8], 4294967040 }
 0x2cf PF: > { %s32_s21 = sadd.s32 1, %s1616_s21   ;;  %s2260_s11 = sld [smem:[#allocation24_spill]] }
 0x2d0   : > { %p29_p5 = scmp.ge.s32.totalorder %s32_s21, 6   ;;  %s2261_s15 = sld [smem:[#allocation27_spill]] }
 0x2d1   : > { %s2262_s2 = sld [smem:[#allocation25_spill]]  ;;  %s2263_s18 = sld [smem:[#allocation28_spill]] }
 0x2d2   : > { %s2264_s25 = sld [smem:[#allocation26_spill]]  ;;  %s2265_s0 = smov %s1576_s1 }
 0x2d3   : > { %s2266_s1 = smov %s1580_s12  ;;  %s2267_s12 = smov %s1937_s13 }
 0x2d4   : > { %s2268_s13 = smov %s1588_s14  ;;  %s2270_s16 = smov %s1600_s17 }
 0x2d5   : > { %s2269_s14 = smov %s2260_s11  ;;  %s2272_s19 = smov %s1612_s20 }
 0x2d6   :  { %31 = sbr.rel (!%p29_p5) target bundleno = 27 (0x1b), region = 127 }
 0x2d7   : > { %s2271_s17 = smov %s2262_s2 }
 0x2d8   : > { %s2273_s20 = smov %s2264_s25 }
 0x2dd   :  { %905 = vsyncpa [#allocation7], 1 }
 0x2de   :  { %907 = vsyncpa [#allocation7 + $0x1], 1 }
 0x2df   :  { %908 = vsyncpa [#allocation10], 1 }
 0x2e0   :  { %910 = vsyncpa [#allocation10 + $0x1], 1 }
 0x2e1   :  { %911 = vsyncpa [#allocation8], 1 }
 0x2e2   :  { %913 = vsyncpa [#allocation8 + $0x1], 1 }

</bundles_post_ra>
